<compile_context>
chip_gen: v5e
topology: v5e:2x2
jax: 0.10.0
libtpu: 0.0.40
codegen_flags: <defaults>
</compile_context>

<pallas_src>
import math

import jax
import jax.numpy as jnp
from jax import lax
from jax.experimental import pallas as pl
from jax.experimental.pallas import tpu as pltpu


_MAX_DX_TILE = 4096            # lanes per x/out tile on the wide path (mult of 128)
_MAX_GROUP_LANES = 16384       # cap on packed row width g*Dx for the grouped path
_MAX_SEL_BYTES = 4 * 1024 * 1024  # cap on resident selector bytes (factored form)


def _sublane_quantum(dtype) -> int:
    # f32 -> 8, bf16 -> 16, int8/fp8 -> 32 rows per packed sublane tile.
    return {4: 8, 2: 16, 1: 32}.get(jnp.dtype(dtype).itemsize, 8)


def _tpu_vmem_capacity() -> int:
    try:
        cap = int(pltpu.get_tpu_info().vmem_capacity_bytes)
        if cap > 0:
            return cap
    except Exception:
        pass
    return 64 * 1024 * 1024    # conservative (v7x-sized) fallback


def _default_target_tile_bytes() -> int:
    # Combined x + out + y (+ in-kernel f32 intermediates) bytes touched per
    # grid step.  The pipeline double-buffers the streams, so keep the
    # per-step target near 1/5 of physical VMEM (v7x: 64 MiB -> ~12 MiB;
    # v5e/v6e: 128 MiB -> 12 MiB cap as well).
    cap = _tpu_vmem_capacity()
    return int(min(12 * 1024 * 1024, cap // 5))


def _vmem_limit_bytes() -> int:
    # Raise the scoped-VMEM limit well above the 16/32 MiB defaults while
    # leaving headroom: v7x -> 48 MiB of 64; v5e/v6e -> 96 MiB of 128.
    cap = _tpu_vmem_capacity()
    return int(min(cap * 3 // 4, 96 * 1024 * 1024))


def _pick_rows(total_rows, bytes_per_row, quantum, target_bytes):
    """Largest row tile that is a multiple of `quantum` and fits `target_bytes`
    (or the full extent, which is always legal)."""
    if total_rows * bytes_per_row <= target_bytes:
        return int(total_rows)
    rows = (int(target_bytes) // max(int(bytes_per_row), 1)) // quantum * quantum
    rows = max(quantum, rows)
    return int(min(rows, total_rows))


# ---------------------------------------------------------------------------
# Kernels
# ---------------------------------------------------------------------------

def _mask_rowsum_kernel(x_ref, y_ref, o_ref):
    # x_ref/o_ref: (rows, dx_tile)   y_ref: (rows, Dy)
    s = jnp.sum(y_ref[...].astype(jnp.float32), axis=-1, keepdims=True)  # (rows,1)
    o_ref[...] = x_ref[...] * (s != 0.0).astype(o_ref.dtype)


def _mask_grouped_kernel(x_ref, y_ref, sel_sum_ref, sel_bcast_ref, o_ref):
    # x_ref/o_ref: (rows, g*Dx)   y_ref: (rows, g*Dy)
    # sel_sum_ref:   (g*Dy, g)   0/1 block-diag -> per-original-row sums
    # sel_bcast_ref: (g, g*Dx)   0/1 block-diag -> broadcast mask over Dx lanes
    # Selectors are hoisted to the wrapper (constant index_map => DMA'd once,
    # stay resident); MXU is otherwise idle, so both matmuls are free slots.
    sums = jnp.dot(y_ref[...].astype(jnp.float32), sel_sum_ref[...],
                   preferred_element_type=jnp.float32,
                   precision=lax.Precision.HIGHEST)                 # (rows, g)
    mask = (sums != 0.0).astype(jnp.float32)                        # exact 0/1
    mask_wide = jnp.dot(mask, sel_bcast_ref[...],
                        preferred_element_type=jnp.float32)         # (rows, g*Dx)
    o_ref[...] = x_ref[...] * mask_wide.astype(o_ref.dtype)


# ---------------------------------------------------------------------------
# Wrapper
# ---------------------------------------------------------------------------

def mask_forward(x, y, *, target_tile_bytes=None, max_dx_tile=_MAX_DX_TILE):
    """out[b, t, :] = x[b, t, :] * sign(|sum_d y[b, t, d]|)   (Mask.forward)."""
    B, T, Dx = x.shape
    By, Ty, Dy = y.shape
    assert B == By and T == Ty, "x and y must share batch and sequence dims"

    if target_tile_bytes is None:
        target_tile_bytes = _default_target_tile_bytes()
    vmem_limit = _vmem_limit_bytes()

    x_isz = jnp.dtype(x.dtype).itemsize
    y_isz = jnp.dtype(y.dtype).itemsize
    q = max(_sublane_quantum(x.dtype), _sublane_quantum(y.dtype))

    # Flatten batch into the row axis so tiles can span batch boundaries:
    # small-T inputs no longer force KiB-sized per-step DMAs, and there are
    # always enough parallel grid steps for megacore sharding.
    N = B * T
    xf = x.reshape(N, Dx)
    yf = y.reshape(N, Dy)

    # ---- lane-dense grouped path (Dx not a multiple of 128) ----------------
    groups = 1
    if Dx % 128 != 0:
        g = 128 // math.gcd(Dx, 128)          # smallest g with (g*Dx) % 128 == 0
        sel_bytes = g * g * (Dx + Dy) * 4     # factored 0/1 selectors, f32
        if (g > 1 and g * Dx <= _MAX_GROUP_LANES
                and sel_bytes <= min(_MAX_SEL_BYTES, vmem_limit // 8)):
            groups = g

    if groups > 1:
        g = groups
        Np = -(-N // g) * g
        if Np != N:                            # pad rows so the repack is exact
            xf = jnp.pad(xf, ((0, Np - N), (0, 0)))
            yf = jnp.pad(yf, ((0, Np - N), (0, 0)))
        Ng = Np // g
        wx, wy = g * Dx, g * Dy
        xg = xf.reshape(Ng, wx)                # last dim is a multiple of 128
        yg = yf.reshape(Ng, wy)

        # Hoisted factored block-diagonal selectors (built once in the wrapper).
        gid = jnp.arange(g)
        sel_sum = (jnp.arange(wy)[:, None] // Dy == gid[None, :]).astype(jnp.float32)
        sel_bcast = (gid[:, None] == jnp.arange(wx)[None, :] // Dx).astype(jnp.float32)
        sel_bytes = (wy * g + g * wx) * 4

        # Per packed row: x + out + y streams plus f32 mask_wide intermediate
        # and its cast to the output dtype.
        row_bytes = 2 * wx * x_isz + wy * y_isz + wx * 4 + wx * x_isz
        rows = _pick_rows(Ng, row_bytes, q,
                          max(target_tile_bytes - sel_bytes, row_bytes))
        grid = (pl.cdiv(Ng, rows),)
        out = pl.pallas_call(
            _mask_grouped_kernel,
            out_shape=jax.ShapeDtypeStruct((Ng, wx), x.dtype),
            grid=grid,
            in_specs=[
                pl.BlockSpec((rows, wx), lambda t: (t, 0)),
                pl.BlockSpec((rows, wy), lambda t: (t, 0)),
                # Constant index maps -> fetched once, stay resident in VMEM.
                pl.BlockSpec((wy, g), lambda t: (0, 0)),
                pl.BlockSpec((g, wx), lambda t: (0, 0)),
            ],
            out_specs=pl.BlockSpec((rows, wx), lambda t: (t, 0)),
            compiler_params=pltpu.CompilerParams(
                dimension_semantics=("parallel",),
                vmem_limit_bytes=vmem_limit),
        )(xg, yg, sel_sum, sel_bcast)
        return out.reshape(Np, Dx)[:N].reshape(B, T, Dx)

    # ---- wide / already lane-dense row-sum path -----------------------------
    dx_tile = Dx
    if Dx % 128 == 0 and Dx > max_dx_tile:
        dx_tile = max(128, (max_dx_tile // 128) * 128)     # multiple of 128
    row_bytes = 2 * dx_tile * x_isz + Dy * y_isz
    rows = _pick_rows(N, row_bytes, q, target_tile_bytes)
    grid = (pl.cdiv(N, rows), pl.cdiv(Dx, dx_tile))
    out = pl.pallas_call(
        _mask_rowsum_kernel,
        out_shape=jax.ShapeDtypeStruct((N, Dx), x.dtype),
        grid=grid,
        in_specs=[
            pl.BlockSpec((rows, dx_tile), lambda t, d: (t, d)),
            # y's index map ignores d: the block index is unchanged between
            # consecutive d steps, so the pipeline skips the redundant DMA.
            pl.BlockSpec((rows, Dy), lambda t, d: (t, 0)),
        ],
        out_specs=pl.BlockSpec((rows, dx_tile), lambda t, d: (t, d)),
        compiler_params=pltpu.CompilerParams(
            # No accumulator: every (t, d) step writes a distinct output block,
            # so both axes are 'parallel' (lets v7x megacore split Dx tiles).
            dimension_semantics=("parallel", "parallel"),
            vmem_limit_bytes=vmem_limit),
    )(xf, yf)
    return out.reshape(B, T, Dx)


def mask_forward_ref(x, y):
    # Pure-JAX reference of the PyTorch Mask.forward
    mask = jnp.sign(jnp.abs(jnp.sum(y, axis=-1)))[..., None]
    return x * mask


if __name__ == "__main__":
    key = jax.random.PRNGKey(0)

    def make_case(k, B, T, Dx, Dy, valid_len):
        kx, ky = jax.random.split(k)
        x = jax.random.normal(kx, (B, T, Dx), dtype=jnp.float32)
        y = jax.random.normal(ky, (B, T, Dy), dtype=jnp.float32)
        valid = (jnp.arange(T) < valid_len).astype(jnp.float32)[None, :, None]
        return x, y * valid

    # (B, T, Dx, Dy, valid_len, target_tile_bytes, max_dx_tile) exercising:
    #   1) narrow Dx=32  -> grouped lane-dense path (g=4, packed width 128)
    #   2) Dx=128        -> row-sum path with forced row tiling (several tiles)
    #   3) Dx=100        -> grouped path with row padding (g=32, N padded 20->32)
    #   4) Dx=384, T=21  -> row-sum path with a partial edge row block
    #   5) Dx=256, tile 128 -> row-sum path with 2 Dx tiles (y DMA reused)
    cases = [
        (2, 8, 32, 16, 5, None, _MAX_DX_TILE),
        (2, 24, 128, 64, 17, 16 * 1024, _MAX_DX_TILE),
        (2, 10, 100, 24, 6, None, _MAX_DX_TILE),
        (2, 21, 384, 48, 13, 8 * 1024, _MAX_DX_TILE),
        (2, 16, 256, 32, 9, 8 * 1024, 128),
    ]

    keys = jax.random.split(key, len(cases))
    for k, (B, T, Dx, Dy, vl, tb, mdx) in zip(keys, cases):
        x, y = make_case(k, B, T, Dx, Dy, vl)
        out = mask_forward(x, y, target_tile_bytes=tb, max_dx_tile=mdx)
        jax.block_until_ready(out)
        ref = mask_forward_ref(x, y)
        assert out.shape == (B, T, Dx)
        assert jnp.allclose(out, ref, atol=1e-6, rtol=1e-6), (
            f"mismatch vs reference for shape {(B, T, Dx, Dy)}")

    print("KERNEL_OK")
</pallas_src>

<mosaic_0001>
module attributes {stable_mosaic.version = 11 : i64} {
  func.func @_mask_grouped_kernel(%arg0: i32, %arg1: memref<4x128xf32, #tpu.memory_space<vmem>>, %arg2: memref<4x64xf32, #tpu.memory_space<vmem>>, %arg3: memref<64x4xf32, #tpu.memory_space<vmem>>, %arg4: memref<4x128xf32, #tpu.memory_space<vmem>>, %arg5: memref<4x128xf32, #tpu.memory_space<vmem>>) attributes {dimension_semantics = [#tpu.dimension_semantics<parallel>], iteration_bounds = array<i64: 1>, scalar_prefetch = 0 : i64, scratch_operands = 0 : i64, tpu.core_type = #tpu.core_type<tc>, window_params = [{transform_indices = @transform_0, window_bounds = array<i64: 4, 128>}, {transform_indices = @transform_1, window_bounds = array<i64: 4, 64>}, {pipeline_mode = #tpu.pipeline_mode<synchronous>, transform_indices = @transform_2, window_bounds = array<i64: 64, 4>}, {pipeline_mode = #tpu.pipeline_mode<synchronous>, transform_indices = @transform_3, window_bounds = array<i64: 4, 128>}, {transform_indices = @transform_4, window_bounds = array<i64: 4, 128>}]} {
    %c0 = arith.constant 0 : index
    %c0_0 = arith.constant 0 : index
    %0 = vector.load %arg2[%c0, %c0_0] : memref<4x64xf32, #tpu.memory_space<vmem>>, vector<4x64xf32>
    %c0_1 = arith.constant 0 : index
    %c0_2 = arith.constant 0 : index
    %1 = vector.load %arg3[%c0_1, %c0_2] : memref<64x4xf32, #tpu.memory_space<vmem>>, vector<64x4xf32>
    %cst = arith.constant dense<0.000000e+00> : vector<4x4xf32>
    %2 = tpu.matmul %0, %1, %cst {dimension_numbers = #tpu.dot_dimension_numbers<[1], [0], [0], [1], [0, 0, 1, 1], [], []>, precision = #tpu.contract_precision<fp32>} : vector<4x64xf32>, vector<64x4xf32>, vector<4x4xf32> -> vector<4x4xf32>
    %cst_3 = arith.constant 0.000000e+00 : f32
    %3 = vector.broadcast %cst_3 : f32 to vector<4x4xf32>
    %4 = arith.cmpf one, %2, %3 : vector<4x4xf32>
    %5 = arith.extui %4 : vector<4x4xi1> to vector<4x4xi32>
    %6 = arith.sitofp %5 : vector<4x4xi32> to vector<4x4xf32>
    %c0_4 = arith.constant 0 : index
    %c0_5 = arith.constant 0 : index
    %7 = vector.load %arg4[%c0_4, %c0_5] : memref<4x128xf32, #tpu.memory_space<vmem>>, vector<4x128xf32>
    %cst_6 = arith.constant dense<0.000000e+00> : vector<4x128xf32>
    %8 = tpu.matmul %6, %7, %cst_6 {dimension_numbers = #tpu.dot_dimension_numbers<[1], [0], [0], [1], [0, 0, 1, 1], [], []>} : vector<4x4xf32>, vector<4x128xf32>, vector<4x128xf32> -> vector<4x128xf32>
    %c0_7 = arith.constant 0 : index
    %c0_8 = arith.constant 0 : index
    %9 = vector.load %arg1[%c0_7, %c0_8] : memref<4x128xf32, #tpu.memory_space<vmem>>, vector<4x128xf32>
    %10 = arith.mulf %9, %8 : vector<4x128xf32>
    %c0_9 = arith.constant 0 : index
    %c0_10 = arith.constant 0 : index
    %11 = vector.load %arg5[%c0_9, %c0_10] : memref<4x128xf32, #tpu.memory_space<vmem>>, vector<4x128xf32>
    tpu.vector_store %arg5[%c0_9, %c0_10], %10 {strides = array<i32>} : memref<4x128xf32, #tpu.memory_space<vmem>>, vector<4x128xf32>,
    return
  }
  func.func @transform_0(%arg0: i32) -> (i32, i32) {
    %c0_i32 = arith.constant 0 : i32
    %c0_i32_0 = arith.constant 0 : i32
    return %arg0, %c0_i32 : i32, i32
  }
  func.func @transform_1(%arg0: i32) -> (i32, i32) {
    %c0_i32 = arith.constant 0 : i32
    %c0_i32_0 = arith.constant 0 : i32
    return %arg0, %c0_i32 : i32, i32
  }
  func.func @transform_2(%arg0: i32) -> (i32, i32) {
    %c0_i32 = arith.constant 0 : i32
    %c0_i32_0 = arith.constant 0 : i32
    %c0_i32_1 = arith.constant 0 : i32
    return %c0_i32, %c0_i32_0 : i32, i32
  }
  func.func @transform_3(%arg0: i32) -> (i32, i32) {
    %c0_i32 = arith.constant 0 : i32
    %c0_i32_0 = arith.constant 0 : i32
    %c0_i32_1 = arith.constant 0 : i32
    return %c0_i32, %c0_i32_0 : i32, i32
  }
  func.func @transform_4(%arg0: i32) -> (i32, i32) {
    %c0_i32 = arith.constant 0 : i32
    %c0_i32_0 = arith.constant 0 : i32
    return %arg0, %c0_i32 : i32, i32
  }
}

</mosaic_0001>

<bundles_post_ra>
// kernel: tpu_custom_call.1
= control target key start
LH: loop header
LB: loop body
LE: loop exit
PB: predicated region body
PF: predicated region fallthrough
CT: control target
= control target key end

     0   :  { %s496_s0 = inlined_call_operand.vmem [shape: f32[4,128], index: 0, kind: input, shape index: {}]   ;;  %s497_s1 = inlined_call_operand.vmem [shape: f32[4,64], index: 1, kind: input, shape index: {}]   ;;  %s498_s2 = inlined_call_operand.vmem [shape: f32[64,4], index: 2, kind: input, shape index: {}]   ;;  %s499_s3 = inlined_call_operand.vmem [shape: f32[4,128], index: 3, kind: input, shape index: {}]   ;;  %s500_s4 = inlined_call_operand.hbm [shape: f32[4,128], index: 4, kind: output, shape index: {}]  }
   0x1   :  { %v26_v0 = vld [vmem:[%s498_s2 + $0x38] sm:$0xff]  ;;  %v25_v1 = vld [vmem:[%s498_s2 + $0x30] sm:$0xff]  ;;  %v24_v2 = vld [vmem:[%s498_s2 + $0x28] sm:$0xff] }
   0x2   :  { %v386_v3 = vand.u32 4294901760, %v26_v0  ;;  %v388_v4 = vand.u32 4294901760, %v25_v1  ;;  %v390_v5 = vand.u32 4294901760, %v24_v2  ;;  %v23_v6 = vld [vmem:[%s498_s2 + $0x20] sm:$0xff]  ;;  %v22_v7 = vld [vmem:[%s498_s2 + $0x18] sm:$0xff]  ;;  %v21_v8 = vld [vmem:[%s498_s2 + $0x10] sm:$0xff] }
   0x3   :  { %v401_v9 = vand.u32 4294901760, %v23_v6  ;;  %v403_v10 = vand.u32 4294901760, %v22_v7  ;;  %v405_v11 = vand.u32 4294901760, %v21_v8  ;;  %v20_v12 = vld [vmem:[%s498_s2 + $0x8] sm:$0xff]  ;;  %v19_v13 = vld [vmem:[%s498_s2] sm:$0xff] }
   0x4   :  { %40 = vmatpush.msra.mxu0 %v386_v3  ;;  %v415_v14 = vsub.f32 %v26_v0, %v386_v3  ;;  %v418_v15 = vsub.f32 %v25_v1, %v388_v4  ;;  %172 = vmatpush.msra.mxu3 %v386_v3  ;;  %v422_v16 = vsub.f32 %v24_v2, %v390_v5  ;;  %v424_v17 = vand.u32 4294901760, %v20_v12 }
   0x5   :  { %9 = vsyncpa [#allocation3], 0  ;;  %v427_v18 = vsub.f32 %v23_v6, %v401_v9  ;;  %v430_v19 = vsub.f32 %v22_v7, %v403_v10  ;;  %v433_v20 = vsub.f32 %v21_v8, %v405_v11  ;;  %v440_v24 = vand.u32 4294901760, %v19_v13  ;;  %v18_v32 = vld [vmem:[%s497_s1] sm:$0xf]  ;;  %s351_s8 = smov [#allocation2]  }
   0x6   :  { %42 = vmatpush.msra.mxu0 %v388_v4  ;;  %v74_v21 = vand.u32 4294901760, %v415_v14  ;;  %135 = vmatpush.msra.mxu2 %v415_v14  ;;  %v80_v22 = vand.u32 4294901760, %v418_v15  ;;  %v86_v23 = vand.u32 4294901760, %v422_v16  ;;  %v445_v26 = vsub.f32 %v20_v12, %v424_v17  ;;  %v271_v55 = vld [vmem:[%s499_s3] sm:$0xf]  ;;  %s308_s9 = sshll.u32 %s351_s8, 4  ;;  %s309_s9 = int_to_ptr.vmem [resolvable:$true] %s308_s9 }
   0x7   :  { %174 = vmatpush.msra.mxu3 %v388_v4  ;;  %v92_v25 = vand.u32 4294901760, %v427_v18  ;;  %v98_v30 = vand.u32 4294901760, %v430_v19  ;;  %v104_v31 = vand.u32 4294901760, %v433_v20  ;;  %vm27_vm0 = vcmask 523264   ;;  %s310_s12 = sshll.u32 %s500_s4, 4  ;;  %s311_s12 = int_to_ptr.hbm [resolvable:$true] %s310_s12 }
   0x8   :  { %44 = vmatpush.msra.mxu0 %v390_v5  ;;  %v75_v27 = vsub.f32 %v415_v14, %v74_v21  ;;  %v81_v28 = vsub.f32 %v418_v15, %v80_v22  ;;  %138 = vmatpush.msra.mxu2 %v418_v15  ;;  %v87_v29 = vsub.f32 %v422_v16, %v86_v23  ;;  %v110_v39 = vand.u32 4294901760, %v445_v26 }
   0x9   :  { %176 = vmatpush.msra.mxu3 %v390_v5  ;;  %v93_v35 = vsub.f32 %v427_v18, %v92_v25  ;;  %v115_v36 = vsub.f32 %v19_v13, %v440_v24  ;;  %v99_v38 = vsub.f32 %v430_v19, %v98_v30  ;;  %v29_v40 = vsel %vm27_vm0, %v18_v32, 0 }
   0xa   :  { %v76_v33 = vand.u32 4294901760, %v75_v27  ;;  %46 = vmatpush.msra.mxu0 %v401_v9  ;;  %v82_v34 = vand.u32 4294901760, %v81_v28  ;;  %141 = vmatpush.msra.mxu2 %v422_v16  ;;  %v88_v37 = vand.u32 4294901760, %v87_v29  ;;  %v55_v41 = vand.u32 4294901760, %v29_v40 }
   0xb   :  { %178 = vmatpush.msra.mxu3 %v401_v9  ;;  %v94_v42 = vand.u32 4294901760, %v93_v35  ;;  %v105_v43 = vsub.f32 %v433_v20, %v104_v31  ;;  %v116_v44 = vand.u32 4294901760, %v115_v36  ;;  %v100_v46 = vand.u32 4294901760, %v99_v38 }
   0xc   :  { %77 = vmatpush.msra.mxu1 %v76_v33  ;;  %48 = vmatpush.msra.mxu0 %v403_v10  ;;  %v56_v45 = vsub.f32 %v29_v40, %v55_v41  ;;  %v111_v47 = vsub.f32 %v445_v26, %v110_v39  ;;  %vm276_vm1 = vcmask 1043456   ;;  %vm272_vm2 = vcmask 31744  }
   0xd   :  { %144 = vmatpush.msra.mxu2 %v427_v18  ;;  %180 = vmatpush.msra.mxu3 %v403_v10  ;;  %v106_v49 = vand.u32 4294901760, %v105_v43  ;;  %v117_v50 = vsub.f32 %v115_v36, %v116_v44 }
   0xe   :  { %83 = vmatpush.msra.mxu1 %v82_v34  ;;  %50 = vmatpush.msra.mxu0 %v405_v11  ;;  %v57_v48 = vand.u32 4294901760, %v56_v45  ;;  %v112_v52 = vand.u32 4294901760, %v111_v47 }
   0xf   :  { %147 = vmatpush.msra.mxu2 %v430_v19  ;;  %182 = vmatpush.msra.mxu3 %v405_v11  ;;  %v118_v54 = vand.u32 4294901760, %v117_v50 }
  0x10   :  { %89 = vmatpush.msra.mxu1 %v88_v37  ;;  %52 = vmatpush.msra.mxu0 %v424_v17  ;;  %v58_v51 = vsub.f32 %v56_v45, %v57_v48 }
  0x11   :  { %150 = vmatpush.msra.mxu2 %v433_v20  ;;  %184 = vmatpush.msra.mxu3 %v424_v17 }
  0x12   :  { %95 = vmatpush.msra.mxu1 %v94_v42  ;;  %54 = vmatpush.msra.mxu0 %v440_v24  ;;  %v59_v53 = vand.u32 4294901760, %v58_v51 }
  0x13   :  { %153 = vmatpush.msra.mxu2 %v445_v26  ;;  %186 = vmatpush.msra.mxu3 %v440_v24 }
  0x14   :  { %205 = vmatpush.msrb.mxu0 %v74_v21  ;;  %101 = vmatpush.msra.mxu1 %v100_v46 }
  0x15   :  { %156 = vmatpush.msra.mxu2 %v115_v36  ;;  %190 = vmatmul.f32.vlgmr.msra.gmra.mxu3 %v57_v48 }
  0x16   :  { %209 = vmatpush.msrb.mxu0 %v80_v22  ;;  %107 = vmatpush.msra.mxu1 %v106_v49 }
  0x17   :  { %159 = vmatmul.f32.vlgmr.msra.gmra.mxu2 %v56_v45  ;;  %60 = vmatmul.f32.vlgmr.msra.gmra.mxu0 %v59_v53 }
  0x18   :  { %213 = vmatpush.msrb.mxu0 %v86_v23  ;;  %113 = vmatpush.msra.mxu1 %v112_v52 }
  0x19   :  { %320 = vmatpush.msk.msrb.mxu2 %vm276_vm1, %v271_v55 }
  0x1a   :  { %217 = vmatpush.msrb.mxu0 %v92_v25  ;;  %119 = vmatpush.msra.mxu1 %v118_v54 }
  0x1b   :  { %121 = vmatmul.f32.vlgmr.msra.gmra.mxu1 %v55_v41 }
  0x1c   :  { %248 = vmatpush.msrb.mxu1 %v386_v3  ;;  %221 = vmatpush.msrb.mxu0 %v98_v30  ;;  %v350_v3 = vmov 0.0  }
  0x1e   :  { %250 = vmatpush.msrb.mxu1 %v388_v4  ;;  %225 = vmatpush.msrb.mxu0 %v104_v31 }
  0x20   :  { %252 = vmatpush.msrb.mxu1 %v390_v5  ;;  %229 = vmatpush.msrb.mxu0 %v110_v39  ;;  %v300_v5 = vld [vmem:[%s496_s0] sm:$0xf] }
  0x22   :  { %254 = vmatpush.msrb.mxu1 %v401_v9  ;;  %233 = vmatpush.msrb.mxu0 %v116_v44 }
  0x23   :  { %235 = vmatmul.f32.vlgmr.msrb.gmra.mxu0 %v55_v41 }
  0x24   :  { %256 = vmatpush.msrb.mxu1 %v403_v10 }
  0x26   :  { %258 = vmatpush.msrb.mxu1 %v405_v11 }
  0x28   :  { %260 = vmatpush.msrb.mxu1 %v424_v17 }
  0x2a   :  { %262 = vmatpush.msrb.mxu1 %v440_v24 }
  0x2b   :  { %264 = vmatmul.f32.vlgmr.msrb.gmra.mxu1 %v55_v41 }
  0x94   :  { %v61_v56 = vpop.f32.mrf.mxu0 }
  0x98   :  { %v122_v57 = vpop.f32.mrf.mxu1  ;;  %v191_v61 = vpop.f32.mrf.mxu3 }
  0x99   :  { %v123_v58 = vadd.f32 %v122_v57, %v61_v56 }
  0x9a   :  { %v160_v59 = vpop.f32.mrf.mxu2 }
  0x9b   :  { %v161_v60 = vadd.f32 %v160_v59, %v123_v58 }
  0x9d   :  { %v192_v62 = vadd.f32 %v191_v61, %v161_v60 }
  0xa0   :  { %v236_v63 = vpop.f32.mrf.mxu0 }
  0xa1   :  { %v237_v0 = vadd.f32 %v236_v63, %v192_v62 }
  0xa8   :  { %v265_v1 = vpop.f32.mrf.mxu1 }
  0xa9   :  { %v266_v2 = vadd.f32 %v265_v1, %v237_v0 }
  0xab   :  { %vm268_vm3 = vcmp.ne.f32.partialorder %v266_v2, 0.0 }
  0xac   :  { %v319_v4 = vsel %vm268_vm3, 1.0, %v350_v3 }
  0xad   :  { %321 = vmatmul.msk.f32.vlgmr.msrb.gmra.mxu2 %vm272_vm2, %v319_v4 }
 0x130   :  { %v297_v6 = vpop.f32.mrf.mxu2 }
 0x131   :  { %v301_v7 = vmul.f32 %v300_v5, %v297_v6 }
 0x133   :  { %302 = vst [vmem:[#allocation2] sm:$0xf] %v301_v7 }
 0x134   :  { %313 = dma.vmem_to_hbm [thread:$0]  %s309_s9, 64, %s311_s12, [#allocation3]  }
 0x135   :  { %348 = dma.done.wait [#allocation3], 64  }
 0x136   :  { %349 = vsyncadd [#allocation3], 4294967232 }
 0x137   :  { %318 = vsyncpa [#allocation3], 1 }

</bundles_post_ra>
